<compile_context>
chip_gen: v5e
topology: v5e:2x2
jax: 0.10.0
libtpu: 0.0.40
codegen_flags: <defaults>
</compile_context>

<pallas_src>
import math
import jax
import jax.numpy as jnp
from jax import lax
from jax.experimental import pallas as pl
from jax.experimental.pallas import tpu as pltpu

NEG_SLOPE = 0.01  # nn.LeakyReLU() default


def _leaky_relu(x):
    return jnp.where(x >= 0, x, NEG_SLOPE * x)


# ----------------------------------------------------------------------------
# Fused kernel: conv stack (+pool, +LeakyReLU) + Linear, all in VMEM.
# ----------------------------------------------------------------------------
def _make_fused_kernel(*, B, K, pad, layers):
    n_layers = len(layers)

    def kernel(*refs):
        x_ref = refs[0]                                      # (c_in0, B*lp_in0)
        w_refs = [refs[1 + 2 * i] for i in range(n_layers)]  # (K, c_out, c_in)
        b_refs = [refs[2 + 2 * i] for i in range(n_layers)]  # (c_out, 1)
        fcw_ref = refs[1 + 2 * n_layers]                     # (l_final, f_out)
        fcb_ref = refs[2 + 2 * n_layers]                     # (1, f_out)
        out_ref = refs[3 + 2 * n_layers]                     # (B*c_final, f_out)
        scratch = list(refs[4 + 2 * n_layers:])              # padded inter-layer buffers

        cur = x_ref[...]  # zero-padded per batch segment, batch folded on lanes
        h_final = None
        for i, lyr in enumerate(layers):
            c_out = lyr["c_out"]
            l_in, lp_in = lyr["l_in"], lyr["lp_in"]
            do_pool, p, l_out = lyr["do_pool"], lyr["pool_step"], lyr["l_out"]
            width = B * lp_in - 2 * pad

            # Conv1d ('same' padding): K taps, each one full-width matmul over all
            # batch segments at once; accumulate in vregs.
            w = w_refs[i]
            acc = jnp.dot(w[0], cur[:, 0:width],
                          preferred_element_type=jnp.float32)
            for t in range(1, K):
                acc = acc + jnp.dot(w[t], cur[:, t:t + width],
                                    preferred_element_type=jnp.float32)
            acc = acc + b_refs[i][...]  # (c_out, 1) broadcast over lanes

            is_last = i == n_layers - 1
            if not is_last:
                lp_next = layers[i + 1]["lp_in"]
                nxt = scratch[i]                       # (c_out, B*lp_next)
                nxt[...] = jnp.zeros_like(nxt)         # zero the padding columns

            segs = []
            for b in range(B):
                seg_w = l_out * p if do_pool else l_in
                seg = acc[:, b * lp_in:b * lp_in + seg_w]
                if do_pool:
                    # MaxPool1d(kernel=stride=p), vectorized reshape + reduce.
                    seg = jnp.max(seg.reshape(c_out, l_out, p), axis=-1)
                seg = _leaky_relu(seg)
                # TODO(synk): nn.Dropout(0.05) is identity in eval mode; omitted.
                if is_last:
                    segs.append(seg)
                else:
                    nxt[:, b * lp_next + pad:b * lp_next + pad + l_out] = seg
            if is_last:
                h_final = jnp.concatenate(segs, axis=0)   # (B*c_out, l_out)
            else:
                cur = scratch[i][...]

        # fcn: single (B*C_final, l_final) @ (l_final, f_out) matmul + bias.
        out = jnp.dot(h_final, fcw_ref[...],
                      preferred_element_type=jnp.float32) + fcb_ref[...]
        out_ref[...] = out

    return kernel


def coordinate_encoder_forward(sampled, conv_params, fc_w, fc_b, *,
                               kernel_size, pool_step):
    """Fused forward. sampled: (B, C0, L0); returns (B, C_final, F_out)."""
    B, c0, l0 = map(int, sampled.shape)
    K = int(kernel_size)
    if K % 2 != 1:
        # nn.Conv1d(padding=K//2) with even K changes the length; not supported.
        raise ValueError("kernel_size must be odd for 'same'-padding parity.")
    pad = K // 2

    # Static per-layer shape plan (mirrors the PyTorch branch on the *input* shape).
    layers = []
    c_in, l_in = c0, l0
    for (w, _b) in conv_params:
        c_out = int(w.shape[0])
        do_pool = not (l_in / pool_step < c_in)
        l_out = l_in // pool_step if do_pool else l_in
        layers.append(dict(c_in=c_in, c_out=c_out, l_in=l_in,
                           lp_in=l_in + 2 * pad, do_pool=do_pool,
                           pool_step=pool_step, l_out=l_out))
        c_in, l_in = c_out, l_out
    c_final, l_final = c_in, l_in
    f_out = int(fc_w.shape[0])
    assert int(fc_w.shape[1]) == l_final, (
        f"fcn expects in_features={int(fc_w.shape[1])}, conv stack gives {l_final}")

    # Layer-0 input: batch folded onto lanes with per-segment zero padding.
    xt = jnp.transpose(sampled.astype(jnp.float32), (1, 0, 2))   # (C0, B, L0)
    x_pad = jnp.pad(xt, ((0, 0), (0, 0), (pad, pad)))
    x_pad = x_pad.reshape(c0, B * (l0 + 2 * pad))

    inputs = [x_pad]
    in_specs = [pl.BlockSpec(x_pad.shape, lambda i: (0, 0))]
    for (w, b) in conv_params:
        w_t = jnp.transpose(w, (2, 0, 1)).astype(jnp.float32)    # (K, C_out, C_in)
        b2 = b.reshape(-1, 1).astype(jnp.float32)                # (C_out, 1)
        inputs += [w_t, b2]
        in_specs += [pl.BlockSpec(w_t.shape, lambda i: (0, 0, 0)),
                     pl.BlockSpec(b2.shape, lambda i: (0, 0))]
    fcw_t = fc_w.T.astype(jnp.float32)                           # (l_final, F_out)
    fcb2 = fc_b.reshape(1, -1).astype(jnp.float32)               # (1, F_out)
    inputs += [fcw_t, fcb2]
    in_specs += [pl.BlockSpec(fcw_t.shape, lambda i: (0, 0)),
                 pl.BlockSpec(fcb2.shape, lambda i: (0, 0))]

    # VMEM-resident inter-layer activations (padded layout), tiny at these sizes.
    scratch_shapes = [
        pltpu.VMEM((layers[i]["c_in"], B * layers[i]["lp_in"]), jnp.float32)
        for i in range(1, len(layers))
    ]

    kernel = _make_fused_kernel(B=B, K=K, pad=pad, layers=layers)

    out2d = pl.pallas_call(
        kernel,
        out_shape=jax.ShapeDtypeStruct((B * c_final, f_out), jnp.float32),
        grid_spec=pltpu.PrefetchScalarGridSpec(
            num_scalar_prefetch=0,
            grid=(1,),
            in_specs=in_specs,
            out_specs=pl.BlockSpec((B * c_final, f_out), lambda i: (0, 0)),
            scratch_shapes=scratch_shapes,
        ),
        compiler_params=pltpu.CompilerParams(
            dimension_semantics=("arbitrary",)),
    )(*inputs)
    return out2d.reshape(B, c_final, f_out)


# ----------------------------------------------------------------------------
# get_baseline_samples: sort(|x|) along time, keep k smallest, random-gather n
# per channel (same indices across the batch, as in the PyTorch reference).
# TODO(synk): sort + data-dependent gather kept in plain JAX glue (no clean
#             Pallas TPU equivalent).
# ----------------------------------------------------------------------------
def get_baseline_samples(x, key, k, n):
    B, C, _ = x.shape
    sorted_k = jnp.sort(jnp.abs(x), axis=-1)[:, :, :k]
    idx = jax.random.randint(key, (C, n), 0, k)        # per-channel indices
    idx = jnp.broadcast_to(idx[None], (B, C, n))
    return jnp.take_along_axis(sorted_k, idx, axis=-1).astype(jnp.float32)


# ----------------------------------------------------------------------------
# CoordinateEncoder: deterministic param init + forward pass.
# ----------------------------------------------------------------------------
class CoordinateEncoder:
    def __init__(self, input_dim, output_dim, all_samples, subset_samples,
                 kernel_size, num_layers, pool_step, key):
        self.input_dim = input_dim
        self.output_dim = output_dim
        self.all_samples = all_samples
        self.subset_samples = subset_samples
        self.kernel_size = kernel_size
        self.num_layers = num_layers
        self.pool_step = pool_step

        keys = jax.random.split(key, 2 * num_layers + 2)
        self.conv_params = []
        for i in range(num_layers):
            c_in = input_dim * 2 ** i
            c_out = input_dim * 2 ** (i + 1)
            bound = 1.0 / math.sqrt(c_in * kernel_size)   # PyTorch Conv1d init range
            w = jax.random.uniform(keys[2 * i], (c_out, c_in, kernel_size),
                                   minval=-bound, maxval=bound, dtype=jnp.float32)
            b = jax.random.uniform(keys[2 * i + 1], (c_out,),
                                   minval=-bound, maxval=bound, dtype=jnp.float32)
            self.conv_params.append((w, b))
        bound = 1.0 / math.sqrt(5.0)                       # nn.Linear(5, output_dim)
        self.fc_w = jax.random.uniform(keys[-2], (output_dim, 5),
                                       minval=-bound, maxval=bound, dtype=jnp.float32)
        self.fc_b = jax.random.uniform(keys[-1], (output_dim,),
                                       minval=-bound, maxval=bound, dtype=jnp.float32)

    def __call__(self, x, sample_key):
        sampled = get_baseline_samples(x, sample_key, self.all_samples,
                                       self.subset_samples)
        out = coordinate_encoder_forward(
            sampled, self.conv_params, self.fc_w, self.fc_b,
            kernel_size=self.kernel_size, pool_step=self.pool_step)
        return out, sampled


# ----------------------------------------------------------------------------
# Pure-JAX reference for sanity checking the Pallas path.
# ----------------------------------------------------------------------------
def _ref_forward(model, sampled):
    h = sampled
    for (w, b) in model.conv_params:
        do_pool = not (h.shape[2] / model.pool_step < h.shape[1])
        y = lax.conv_general_dilated(
            h, w, window_strides=(1,), padding=[(model.kernel_size // 2,) * 2],
            dimension_numbers=("NCH", "OIH", "NCH"))
        y = y + b[None, :, None]
        if do_pool:
            p = model.pool_step
            l_out = y.shape[2] // p
            y = y[:, :, : l_out * p].reshape(y.shape[0], y.shape[1], l_out, p).max(-1)
        h = jnp.where(y >= 0, y, NEG_SLOPE * y)
    return jnp.einsum("bcf,of->bco", h, model.fc_w) + model.fc_b[None, None, :]


if __name__ == "__main__":
    key = jax.random.PRNGKey(0)
    k_x, k_params, k_sample = jax.random.split(key, 3)

    # Small shapes consistent with the module: x is (batch, channels, time).
    B, C, T = 2, 4, 16
    x = jax.random.normal(k_x, (B, C, T), dtype=jnp.float32)

    model = CoordinateEncoder(
        input_dim=C, output_dim=3, all_samples=10, subset_samples=10,
        kernel_size=3, num_layers=2, pool_step=2, key=k_params)
    # Layer 0: (2,4,10) -> conv+maxpool -> (2,8,5); Layer 1: conv -> (2,16,5);
    # fcn: Linear(5,3) -> (2,16,3).

    out, sampled = model(x, k_sample)
    out = jax.block_until_ready(out)
    sampled = jax.block_until_ready(sampled)

    ref = _ref_forward(model, sampled)
    assert out.shape == (B, C * 2 ** model.num_layers, 3), out.shape
    assert sampled.shape == (B, C, model.subset_samples), sampled.shape
    assert jnp.allclose(out, ref, atol=1e-4, rtol=1e-4), "mismatch vs reference"

    print("KERNEL_OK")
</pallas_src>

<mosaic_0001>
module attributes {stable_mosaic.version = 11 : i64} {
  func.func @kernel(%arg0: i32, %arg1: memref<4x24xf32, #tpu.memory_space<vmem>>, %arg2: memref<3x8x4xf32, #tpu.memory_space<vmem>>, %arg3: memref<8x1xf32, #tpu.memory_space<vmem>>, %arg4: memref<3x16x8xf32, #tpu.memory_space<vmem>>, %arg5: memref<16x1xf32, #tpu.memory_space<vmem>>, %arg6: memref<5x3xf32, #tpu.memory_space<vmem>>, %arg7: memref<1x3xf32, #tpu.memory_space<vmem>>, %arg8: memref<32x3xf32, #tpu.memory_space<vmem>>, %arg9: memref<8x14xf32, #tpu.memory_space<vmem>>) attributes {dimension_semantics = [#tpu.dimension_semantics<arbitrary>], iteration_bounds = array<i64: 1>, scalar_prefetch = 0 : i64, scratch_operands = 1 : i64, tpu.core_type = #tpu.core_type<tc>, window_params = [{pipeline_mode = #tpu.pipeline_mode<synchronous>, transform_indices = @transform_0, window_bounds = array<i64: 4, 24>}, {pipeline_mode = #tpu.pipeline_mode<synchronous>, transform_indices = @transform_1, window_bounds = array<i64: 3, 8, 4>}, {pipeline_mode = #tpu.pipeline_mode<synchronous>, transform_indices = @transform_2, window_bounds = array<i64: 8, 1>}, {pipeline_mode = #tpu.pipeline_mode<synchronous>, transform_indices = @transform_3, window_bounds = array<i64: 3, 16, 8>}, {pipeline_mode = #tpu.pipeline_mode<synchronous>, transform_indices = @transform_4, window_bounds = array<i64: 16, 1>}, {pipeline_mode = #tpu.pipeline_mode<synchronous>, transform_indices = @transform_5, window_bounds = array<i64: 5, 3>}, {pipeline_mode = #tpu.pipeline_mode<synchronous>, transform_indices = @transform_6, window_bounds = array<i64: 1, 3>}, {pipeline_mode = #tpu.pipeline_mode<synchronous>, transform_indices = @transform_7, window_bounds = array<i64: 32, 3>}]} {
    %c0 = arith.constant 0 : index
    %c0_0 = arith.constant 0 : index
    %0 = vector.load %arg1[%c0, %c0_0] : memref<4x24xf32, #tpu.memory_space<vmem>>, vector<4x24xf32>
    %c0_1 = arith.constant 0 : index
    %c0_2 = arith.constant 0 : index
    %c0_3 = arith.constant 0 : index
    %1 = vector.load %arg2[%c0_1, %c0_2, %c0_3] : memref<3x8x4xf32, #tpu.memory_space<vmem>>, vector<1x8x4xf32>
    %2 = vector.shape_cast %1 : vector<1x8x4xf32> to vector<8x4xf32>
    %3 = vector.extract_strided_slice %0 {offsets = [0, 0], sizes = [4, 22], strides = [1, 1]} : vector<4x24xf32> to vector<4x22xf32>
    %cst = arith.constant dense<0.000000e+00> : vector<8x22xf32>
    %4 = tpu.matmul %2, %3, %cst {dimension_numbers = #tpu.dot_dimension_numbers<[1], [0], [0], [1], [0, 0, 1, 1], [], []>} : vector<8x4xf32>, vector<4x22xf32>, vector<8x22xf32> -> vector<8x22xf32>
    %c1 = arith.constant 1 : index
    %c0_4 = arith.constant 0 : index
    %c0_5 = arith.constant 0 : index
    %5 = vector.load %arg2[%c1, %c0_4, %c0_5] : memref<3x8x4xf32, #tpu.memory_space<vmem>>, vector<1x8x4xf32>
    %6 = vector.shape_cast %5 : vector<1x8x4xf32> to vector<8x4xf32>
    %7 = vector.extract_strided_slice %0 {offsets = [0, 1], sizes = [4, 22], strides = [1, 1]} : vector<4x24xf32> to vector<4x22xf32>
    %cst_6 = arith.constant dense<0.000000e+00> : vector<8x22xf32>
    %8 = tpu.matmul %6, %7, %cst_6 {dimension_numbers = #tpu.dot_dimension_numbers<[1], [0], [0], [1], [0, 0, 1, 1], [], []>} : vector<8x4xf32>, vector<4x22xf32>, vector<8x22xf32> -> vector<8x22xf32>
    %9 = arith.addf %4, %8 : vector<8x22xf32>
    %c2 = arith.constant 2 : index
    %c0_7 = arith.constant 0 : index
    %c0_8 = arith.constant 0 : index
    %10 = vector.load %arg2[%c2, %c0_7, %c0_8] : memref<3x8x4xf32, #tpu.memory_space<vmem>>, vector<1x8x4xf32>
    %11 = vector.shape_cast %10 : vector<1x8x4xf32> to vector<8x4xf32>
    %12 = vector.extract_strided_slice %0 {offsets = [0, 2], sizes = [4, 22], strides = [1, 1]} : vector<4x24xf32> to vector<4x22xf32>
    %cst_9 = arith.constant dense<0.000000e+00> : vector<8x22xf32>
    %13 = tpu.matmul %11, %12, %cst_9 {dimension_numbers = #tpu.dot_dimension_numbers<[1], [0], [0], [1], [0, 0, 1, 1], [], []>} : vector<8x4xf32>, vector<4x22xf32>, vector<8x22xf32> -> vector<8x22xf32>
    %14 = arith.addf %9, %13 : vector<8x22xf32>
    %c0_10 = arith.constant 0 : index
    %c0_11 = arith.constant 0 : index
    %15 = vector.load %arg3[%c0_10, %c0_11] : memref<8x1xf32, #tpu.memory_space<vmem>>, vector<8x1xf32>
    %16 = vector.broadcast %15 : vector<8x1xf32> to vector<8x22xf32>
    %17 = arith.addf %14, %16 : vector<8x22xf32>
    %cst_12 = arith.constant 0.000000e+00 : f32
    %18 = vector.broadcast %cst_12 : f32 to vector<8x14xf32>
    %c0_13 = arith.constant 0 : index
    %c0_14 = arith.constant 0 : index
    %19 = vector.load %arg9[%c0_13, %c0_14] : memref<8x14xf32, #tpu.memory_space<vmem>>, vector<8x14xf32>
    tpu.vector_store %arg9[%c0_13, %c0_14], %18 {strides = array<i32>} : memref<8x14xf32, #tpu.memory_space<vmem>>, vector<8x14xf32>,
    %20 = vector.extract_strided_slice %17 {offsets = [0, 0], sizes = [8, 10], strides = [1, 1]} : vector<8x22xf32> to vector<8x10xf32>
    %21 = vector.shape_cast %20 : vector<8x10xf32> to vector<8x5x2xf32>
    %cst_15 = arith.constant dense<0xFF800000> : vector<8x5xf32>
    %22 = vector.multi_reduction <maximumf>, %21, %cst_15 [2] : vector<8x5x2xf32> to vector<8x5xf32>
    %cst_16 = arith.constant 0.000000e+00 : f32
    %23 = vector.broadcast %cst_16 : f32 to vector<8x5xf32>
    %24 = arith.cmpf oge, %22, %23 : vector<8x5xf32>
    %cst_17 = arith.constant 0.00999999977 : f32
    %25 = vector.broadcast %cst_17 : f32 to vector<8x5xf32>
    %26 = arith.mulf %25, %22 : vector<8x5xf32>
    %27 = arith.select %24, %22, %26 : vector<8x5xi1>, vector<8x5xf32>
    %c0_18 = arith.constant 0 : index
    %c1_19 = arith.constant 1 : index
    %28 = vector.load %arg9[%c0_18, %c1_19] : memref<8x14xf32, #tpu.memory_space<vmem>>, vector<8x5xf32>
    tpu.vector_store %arg9[%c0_18, %c1_19], %27 {strides = array<i32>} : memref<8x14xf32, #tpu.memory_space<vmem>>, vector<8x5xf32>,
    %29 = vector.extract_strided_slice %17 {offsets = [0, 12], sizes = [8, 10], strides = [1, 1]} : vector<8x22xf32> to vector<8x10xf32>
    %30 = vector.shape_cast %29 : vector<8x10xf32> to vector<8x5x2xf32>
    %cst_20 = arith.constant dense<0xFF800000> : vector<8x5xf32>
    %31 = vector.multi_reduction <maximumf>, %30, %cst_20 [2] : vector<8x5x2xf32> to vector<8x5xf32>
    %cst_21 = arith.constant 0.000000e+00 : f32
    %32 = vector.broadcast %cst_21 : f32 to vector<8x5xf32>
    %33 = arith.cmpf oge, %31, %32 : vector<8x5xf32>
    %cst_22 = arith.constant 0.00999999977 : f32
    %34 = vector.broadcast %cst_22 : f32 to vector<8x5xf32>
    %35 = arith.mulf %34, %31 : vector<8x5xf32>
    %36 = arith.select %33, %31, %35 : vector<8x5xi1>, vector<8x5xf32>
    %c0_23 = arith.constant 0 : index
    %c8 = arith.constant 8 : index
    %37 = vector.load %arg9[%c0_23, %c8] : memref<8x14xf32, #tpu.memory_space<vmem>>, vector<8x5xf32>
    tpu.vector_store %arg9[%c0_23, %c8], %36 {strides = array<i32>} : memref<8x14xf32, #tpu.memory_space<vmem>>, vector<8x5xf32>,
    %c0_24 = arith.constant 0 : index
    %c0_25 = arith.constant 0 : index
    %38 = vector.load %arg9[%c0_24, %c0_25] : memref<8x14xf32, #tpu.memory_space<vmem>>, vector<8x14xf32>
    %c0_26 = arith.constant 0 : index
    %c0_27 = arith.constant 0 : index
    %c0_28 = arith.constant 0 : index
    %39 = vector.load %arg4[%c0_26, %c0_27, %c0_28] : memref<3x16x8xf32, #tpu.memory_space<vmem>>, vector<1x16x8xf32>
    %40 = vector.shape_cast %39 : vector<1x16x8xf32> to vector<16x8xf32>
    %41 = vector.extract_strided_slice %38 {offsets = [0, 0], sizes = [8, 12], strides = [1, 1]} : vector<8x14xf32> to vector<8x12xf32>
    %cst_29 = arith.constant dense<0.000000e+00> : vector<16x12xf32>
    %42 = tpu.matmul %40, %41, %cst_29 {dimension_numbers = #tpu.dot_dimension_numbers<[1], [0], [0], [1], [0, 0, 1, 1], [], []>} : vector<16x8xf32>, vector<8x12xf32>, vector<16x12xf32> -> vector<16x12xf32>
    %c1_30 = arith.constant 1 : index
    %c0_31 = arith.constant 0 : index
    %c0_32 = arith.constant 0 : index
    %43 = vector.load %arg4[%c1_30, %c0_31, %c0_32] : memref<3x16x8xf32, #tpu.memory_space<vmem>>, vector<1x16x8xf32>
    %44 = vector.shape_cast %43 : vector<1x16x8xf32> to vector<16x8xf32>
    %45 = vector.extract_strided_slice %38 {offsets = [0, 1], sizes = [8, 12], strides = [1, 1]} : vector<8x14xf32> to vector<8x12xf32>
    %cst_33 = arith.constant dense<0.000000e+00> : vector<16x12xf32>
    %46 = tpu.matmul %44, %45, %cst_33 {dimension_numbers = #tpu.dot_dimension_numbers<[1], [0], [0], [1], [0, 0, 1, 1], [], []>} : vector<16x8xf32>, vector<8x12xf32>, vector<16x12xf32> -> vector<16x12xf32>
    %47 = arith.addf %42, %46 : vector<16x12xf32>
    %c2_34 = arith.constant 2 : index
    %c0_35 = arith.constant 0 : index
    %c0_36 = arith.constant 0 : index
    %48 = vector.load %arg4[%c2_34, %c0_35, %c0_36] : memref<3x16x8xf32, #tpu.memory_space<vmem>>, vector<1x16x8xf32>
    %49 = vector.shape_cast %48 : vector<1x16x8xf32> to vector<16x8xf32>
    %50 = vector.extract_strided_slice %38 {offsets = [0, 2], sizes = [8, 12], strides = [1, 1]} : vector<8x14xf32> to vector<8x12xf32>
    %cst_37 = arith.constant dense<0.000000e+00> : vector<16x12xf32>
    %51 = tpu.matmul %49, %50, %cst_37 {dimension_numbers = #tpu.dot_dimension_numbers<[1], [0], [0], [1], [0, 0, 1, 1], [], []>} : vector<16x8xf32>, vector<8x12xf32>, vector<16x12xf32> -> vector<16x12xf32>
    %52 = arith.addf %47, %51 : vector<16x12xf32>
    %c0_38 = arith.constant 0 : index
    %c0_39 = arith.constant 0 : index
    %53 = vector.load %arg5[%c0_38, %c0_39] : memref<16x1xf32, #tpu.memory_space<vmem>>, vector<16x1xf32>
    %54 = vector.broadcast %53 : vector<16x1xf32> to vector<16x12xf32>
    %55 = arith.addf %52, %54 : vector<16x12xf32>
    %56 = vector.extract_strided_slice %55 {offsets = [0, 0], sizes = [16, 5], strides = [1, 1]} : vector<16x12xf32> to vector<16x5xf32>
    %cst_40 = arith.constant 0.000000e+00 : f32
    %57 = vector.broadcast %cst_40 : f32 to vector<16x5xf32>
    %58 = arith.cmpf oge, %56, %57 : vector<16x5xf32>
    %cst_41 = arith.constant 0.00999999977 : f32
    %59 = vector.broadcast %cst_41 : f32 to vector<16x5xf32>
    %60 = arith.mulf %59, %56 : vector<16x5xf32>
    %61 = arith.select %58, %56, %60 : vector<16x5xi1>, vector<16x5xf32>
    %62 = vector.extract_strided_slice %55 {offsets = [0, 7], sizes = [16, 5], strides = [1, 1]} : vector<16x12xf32> to vector<16x5xf32>
    %cst_42 = arith.constant 0.000000e+00 : f32
    %63 = vector.broadcast %cst_42 : f32 to vector<16x5xf32>
    %64 = arith.cmpf oge, %62, %63 : vector<16x5xf32>
    %cst_43 = arith.constant 0.00999999977 : f32
    %65 = vector.broadcast %cst_43 : f32 to vector<16x5xf32>
    %66 = arith.mulf %65, %62 : vector<16x5xf32>
    %67 = arith.select %64, %62, %66 : vector<16x5xi1>, vector<16x5xf32>
    %68 = tpu.concatenate %61, %67 in 0 : vector<16x5xf32>, vector<16x5xf32> -> vector<32x5xf32>
    %c0_44 = arith.constant 0 : index
    %c0_45 = arith.constant 0 : index
    %69 = vector.load %arg6[%c0_44, %c0_45] : memref<5x3xf32, #tpu.memory_space<vmem>>, vector<5x3xf32>
    %cst_46 = arith.constant dense<0.000000e+00> : vector<32x3xf32>
    %70 = tpu.matmul %68, %69, %cst_46 {dimension_numbers = #tpu.dot_dimension_numbers<[1], [0], [0], [1], [0, 0, 1, 1], [], []>} : vector<32x5xf32>, vector<5x3xf32>, vector<32x3xf32> -> vector<32x3xf32>
    %c0_47 = arith.constant 0 : index
    %c0_48 = arith.constant 0 : index
    %71 = vector.load %arg7[%c0_47, %c0_48] : memref<1x3xf32, #tpu.memory_space<vmem>>, vector<1x3xf32>
    %72 = vector.broadcast %71 : vector<1x3xf32> to vector<32x3xf32>
    %73 = arith.addf %70, %72 : vector<32x3xf32>
    %c0_49 = arith.constant 0 : index
    %c0_50 = arith.constant 0 : index
    %74 = vector.load %arg8[%c0_49, %c0_50] : memref<32x3xf32, #tpu.memory_space<vmem>>, vector<32x3xf32>
    tpu.vector_store %arg8[%c0_49, %c0_50], %73 {strides = array<i32>} : memref<32x3xf32, #tpu.memory_space<vmem>>, vector<32x3xf32>,
    return
  }
  func.func @transform_0(%arg0: i32) -> (i32, i32) {
    %c0_i32 = arith.constant 0 : i32
    %c0_i32_0 = arith.constant 0 : i32
    %c0_i32_1 = arith.constant 0 : i32
    return %c0_i32, %c0_i32_0 : i32, i32
  }
  func.func @transform_1(%arg0: i32) -> (i32, i32, i32) {
    %c0_i32 = arith.constant 0 : i32
    %c0_i32_0 = arith.constant 0 : i32
    %c0_i32_1 = arith.constant 0 : i32
    %c0_i32_2 = arith.constant 0 : i32
    return %c0_i32, %c0_i32_0, %c0_i32_1 : i32, i32, i32
  }
  func.func @transform_2(%arg0: i32) -> (i32, i32) {
    %c0_i32 = arith.constant 0 : i32
    %c0_i32_0 = arith.constant 0 : i32
    %c0_i32_1 = arith.constant 0 : i32
    return %c0_i32, %c0_i32_0 : i32, i32
  }
  func.func @transform_3(%arg0: i32) -> (i32, i32, i32) {
    %c0_i32 = arith.constant 0 : i32
    %c0_i32_0 = arith.constant 0 : i32
    %c0_i32_1 = arith.constant 0 : i32
    %c0_i32_2 = arith.constant 0 : i32
    return %c0_i32, %c0_i32_0, %c0_i32_1 : i32, i32, i32
  }
  func.func @transform_4(%arg0: i32) -> (i32, i32) {
    %c0_i32 = arith.constant 0 : i32
    %c0_i32_0 = arith.constant 0 : i32
    %c0_i32_1 = arith.constant 0 : i32
    return %c0_i32, %c0_i32_0 : i32, i32
  }
  func.func @transform_5(%arg0: i32) -> (i32, i32) {
    %c0_i32 = arith.constant 0 : i32
    %c0_i32_0 = arith.constant 0 : i32
    %c0_i32_1 = arith.constant 0 : i32
    return %c0_i32, %c0_i32_0 : i32, i32
  }
  func.func @transform_6(%arg0: i32) -> (i32, i32) {
    %c0_i32 = arith.constant 0 : i32
    %c0_i32_0 = arith.constant 0 : i32
    %c0_i32_1 = arith.constant 0 : i32
    return %c0_i32, %c0_i32_0 : i32, i32
  }
  func.func @transform_7(%arg0: i32) -> (i32, i32) {
    %c0_i32 = arith.constant 0 : i32
    %c0_i32_0 = arith.constant 0 : i32
    %c0_i32_1 = arith.constant 0 : i32
    return %c0_i32, %c0_i32_0 : i32, i32
  }
}

</mosaic_0001>

<bundles_post_ra>
// kernel: tpu_custom_call.1
= control target key start
LH: loop header
LB: loop body
LE: loop exit
PB: predicated region body
PF: predicated region fallthrough
CT: control target
= control target key end

     0   :  { %s727_s26 = smov 126   ;;  %s728_s27 = smov 127   ;;  %vm37_vm0 = vcmask 1043456   ;;  %vm33_vm1 = vcmask 31744   ;;  %v729_v3 = vmov 0   ;;  %vm138_vm2 = vcmask 1047556   ;;  %s992_s0 = inlined_call_operand.vmem [shape: f32[4,24], index: 0, kind: input, shape index: {}]   ;;  %s993_s2 = inlined_call_operand.vmem [shape: f32[8,1], index: 2, kind: input, shape index: {}]   ;;  %s994_s1 = inlined_call_operand.vmem [shape: f32[3,8,4], index: 1, kind: input, shape index: {}]   ;;  %s995_s3 = inlined_call_operand.vmem [shape: f32[3,16,8], index: 3, kind: input, shape index: {}]   ;;  %s996_s4 = inlined_call_operand.vmem [shape: f32[16,1], index: 4, kind: input, shape index: {}]   ;;  %s997_s5 = inlined_call_operand.vmem [shape: f32[5,3], index: 5, kind: input, shape index: {}]   ;;  %s998_s6 = inlined_call_operand.vmem [shape: f32[1,3], index: 6, kind: input, shape index: {}]   ;;  %s999_s7 = inlined_call_operand.vmem [shape: f32[32,3], index: 7, kind: output, shape index: {}]  }
   0x1   :  { %v26_v0 = vld [vmem:[%s992_s0] sm:$0xf]  ;;  %723 = vset.pattern.permute.xlu1 %v729_v3  ;;  %724 = vset.pattern.permute.xlu2 %v729_v3  ;;  %v694_v4 = vld [vmem:[%s994_s1 + $0x10] sm:$0xff]  ;;  %v689_v6 = vld [vmem:[%s994_s1 + $0x8] sm:$0xff]  ;;  %s731_s12 = smov 122   ;;  %s732_s13 = smov 124  }
   0x2   :  { %87 = vrot.lane.b32.xlu0 %v26_v0, %s727_s26  ;;  %692 = vmatpush.msk.msra.mxu1 %vm37_vm0, %v26_v0  ;;  %v27_v1 = vld [vmem:[%s994_s1] sm:$0xff]  ;;  %s733_s1 = smov 116   ;;  %v734_v17 = vmov 1983009808   ;;  %v735_v27 = vmov 1934713408  }
   0x3   :  { %693 = vmatmul.msk.f32.vlgmr.msra.gmra.mxu1 %vm33_vm1, %v27_v1  ;;  %v115_v2 = vld [vmem:[%s993_s2] sm:$0xff]  ;;  %725 = vset.pattern.permute.xlu0 %v729_v3  ;;  %s730_s2 = smov 120   ;;  %v143_v18 = vunpack.c.l.s4 %v734_v17  ;;  %v177_v28 = vunpack.c.l.s4 %v735_v27  ;;  %vm232_vm3 = vcmask 12288   ;;  %vm122_vm4 = vcmask 113664  }
   0x4   :  { %118 = vperm.xlu1 %723, %v115_v2   ;;  %vm300_vm9 = vcmask 1041409   ;;  %vm302_vm11 = vcmask 1042434  }
   0x5   :  { %v804_v20 = vunpack.c.0.s8 %v143_v18  ;;  %v815_v36 = vunpack.c.0.s8 %v177_v28 }
   0xa   :  { %31 = vrot.lane.b32.xlu0 %v26_v0, %s728_s27 }
  0x74   :  { %v88_v5 = vpop.permute.xlu0 %87 }
  0x75   :  { %695 = vmatpush.msk.msra.mxu3 %vm37_vm0, %v88_v5 }
  0x76   :  { %696 = vmatmul.msk.f32.vlgmr.msra.gmra.mxu3 %vm33_vm1, %v694_v4  ;;  %v119_v12 = vpop.permute.xlu1 %118 }
  0x7c   :  { %v32_v7 = vpop.permute.xlu0 %31 }
  0x7d   :  { %690 = vmatpush.msk.msra.mxu0 %vm37_vm0, %v32_v7  ;;  %vm304_vm0 = vcmask 1043459  }
  0x7e   :  { %691 = vmatmul.msk.f32.vlgmr.msra.gmra.mxu0 %vm33_vm1, %v689_v6 }
  0x80   :  { %v82_v8 = vpop.f32.mrf.mxu1 }
  0xf9   :  { %v111_v10 = vpop.f32.mrf.mxu3 }
  0xfb   :  { %v57_v9 = vpop.f32.mrf.mxu0 }
  0xfc   :  { %v83_v11 = vadd.f32 %v82_v8, %v57_v9 }
  0xfe   :  { %v114_v13 = vadd.f32 %v111_v10, %v83_v11 }
 0x100   :  { %v121_v14 = vadd.f32 %v119_v12, %v114_v13 }
 0x102   :  { %134 = vrot.lane.b32.xlu0 %v121_v14, %s730_s2  ;;  %125 = vrot.lane.b32.xlu2 %v121_v14, %s727_s26  ;;  %v140_v19 = vrot.slane %v121_v14, 4 }
 0x103   :  { %131 = vrot.lane.b32.xlu1 %v121_v14, %s731_s12 }
 0x10a   :  { %128 = vrot.lane.b32.xlu2 %v121_v14, %s732_s13 }
 0x15c   :  { %v126_v15 = vpop.permute.xlu2 %125 }
 0x15d   :  { %319 = vrot.lane.b32.xlu2 %v126_v15, %s733_s1  ;;  %v152_v22 = vrot.slane %v126_v15, 4 }
 0x164   :  { %v129_v16 = vpop.permute.xlu2 %128 }
 0x165   :  { %321 = vrot.lane.b32.xlu0 %v129_v16, %s733_s1  ;;  %v141_v21 = vsel %vm138_vm2, %v129_v16, %v140_v19  ;;  %v137_v39 = vrot.slane %v129_v16, 4 }
 0x166   :  { %v149_v23 = vperm.slane %v141_v21, %v804_v20 }
 0x167   :  { %v139_v43 = vsel %vm138_vm2, %v137_v39, %v121_v14 }
 0x168   :  { %v186_v33 = vrot.slane %v149_v23, 4  ;;  %v145_v48 = vperm.slane %v139_v43, %v804_v20 }
 0x16a   :  { %v174_v63 = vrot.slane %v145_v48, 4 }
 0x174   :  { %v135_v24 = vpop.permute.xlu0 %134 }
 0x175   :  { %v162_v25 = vrot.slane %v135_v24, 4  ;;  %v132_v26 = vpop.permute.xlu1 %131  ;;  %325 = vrot.lane.b32.xlu2 %v135_v24, %s733_s1  ;;  %v167_v47 = vperm.slane %v135_v24, %v804_v20 }
 0x176   :  { %v150_v29 = vrot.slane %v132_v26, 4  ;;  %v153_v30 = vsel %vm138_vm2, %v132_v26, %v152_v22  ;;  %323 = vrot.lane.b32.xlu1 %v132_v26, %s733_s1 }
 0x177   :  { %v163_v31 = vsel %vm138_vm2, 0.0, %v162_v25  ;;  %v161_v32 = vperm.slane %v153_v30, %v804_v20  ;;  %v201_v51 = vperm.slane %v167_v47, %v815_v36  ;;  %v196_v55 = vrot.slane %v167_v47, 4 }
 0x178   :  { %v171_v34 = vperm.slane %v163_v31, %v804_v20  ;;  %v151_v35 = vsel %vm138_vm2, %v150_v29, %v126_v15 }
 0x179   :  { %v187_v38 = vsel %vm138_vm2, %v161_v32, %v186_v33  ;;  %v157_v40 = vperm.slane %v151_v35, %v804_v20  ;;  %v184_v53 = vrot.slane %v161_v32, 4  ;;  %v216_v54 = vrot.slane %v201_v51, 4 }
 0x17a   :  { %v206_v37 = vrot.slane %v171_v34, 4  ;;  %v195_v41 = vperm.slane %v187_v38, %v815_v36  ;;  %v211_v57 = vperm.slane %v171_v34, %v815_v36  ;;  %v197_v60 = vsel %vm138_vm2, 0.0, %v196_v55 }
 0x17b   :  { %v172_v45 = vrot.slane %v157_v40, 4  ;;  %v185_v58 = vsel %vm138_vm2, %v184_v53, %v149_v23  ;;  %v205_v0 = vperm.slane %v197_v60, %v815_v36  ;;  %v175_v2 = vsel %vm138_vm2, %v157_v40, %v174_v63 }
 0x17c   :  { %v207_v42 = vsel %vm138_vm2, 0.0, %v206_v37  ;;  %v230_v46 = vrot.slane %v195_v41, 4  ;;  %v191_v61 = vperm.slane %v185_v58, %v815_v36  ;;  %v224_v62 = vrot.slane %v211_v57, 4 }
 0x17d   :  { %v215_v44 = vperm.slane %v207_v42, %v815_v36  ;;  %v173_v50 = vsel %vm138_vm2, %v172_v45, %v145_v48  ;;  %v183_v4 = vperm.slane %v175_v2, %v815_v36  ;;  %v220_v5 = vrot.slane %v205_v0, 4 }
 0x17e   :  { %317 = vrot.lane.b32.xlu1 %v121_v14, %s733_s1  ;;  %v179_v52 = vperm.slane %v173_v50, %v815_v36  ;;  %v225_v1 = vsel %vm138_vm2, %v224_v62, %v191_v61  ;;  %v226_v8 = vrot.slane %v191_v61, 4 }
 0x17f   :  { %v827_v49 = vsel %vm138_vm2, %v215_v44, %v230_v46  ;;  %v245_v3 = vsel %vm232_vm3, %v225_v1, -inf  ;;  %v221_v6 = vsel %vm138_vm2, %v220_v5, %v183_v4  ;;  %v222_v14 = vrot.slane %v183_v4, 4 }
 0x180   :  { %v217_v56 = vsel %vm138_vm2, %v216_v54, %v179_v52  ;;  %v239_v7 = vsel %vm232_vm3, %v221_v6, -inf  ;;  %v218_v9 = vrot.slane %v179_v52, 4  ;;  %v227_v10 = vsel %vm138_vm2, %v211_v57, %v226_v8 }
 0x181   :  { %v233_v59 = vsel %vm232_vm3, %v217_v56, -inf  ;;  %v248_v12 = vsel %vm232_vm3, %v227_v10, -inf  ;;  %v223_v15 = vsel %vm138_vm2, %v205_v0, %v222_v14  ;;  %v228_v17 = vrot.slane %v215_v44, 4 }
 0x182   :  { %v219_v11 = vsel %vm138_vm2, %v201_v51, %v218_v9  ;;  %v242_v16 = vsel %vm232_vm3, %v223_v15, -inf }
 0x183   :  { %v236_v13 = vsel %vm232_vm3, %v219_v11, -inf  ;;  %v229_v18 = vsel %vm138_vm2, %v228_v17, %v195_v41 }
 0x184   :  { %v251_v19 = vsel %vm232_vm3, %v229_v18, -inf }
 0x18f   :  { %234 = vmax.xlane.f32.xlu0 %v233_v59 }
 0x197   :  { %246 = vmax.xlane.f32.xlu0 %v245_v3 }
 0x19e   :  { %240 = vmax.xlane.f32.xlu2 %v239_v7 }
 0x1a6   :  { %249 = vmax.xlane.f32.xlu2 %v248_v12 }
 0x1a8   :  { %237 = vmax.xlane.f32.xlu1 %v236_v13 }
 0x1b0   :  { %243 = vmax.xlane.f32.xlu1 %v242_v16 }
 0x1b7   :  { %v320_v21 = vpop.permute.xlu2 %319 }
 0x1b8   :  { %252 = vmax.xlane.f32.xlu1 %v251_v19  ;;  %v346_v26 = vrot.slane %v320_v21, 4 }
 0x1cf   :  { %v326_v22 = vpop.permute.xlu2 %325 }
 0x1d0   :  { %v356_v23 = vrot.slane %v326_v22, 4  ;;  %v361_v27 = vperm.slane %v326_v22, %v804_v20 }
 0x1d2   :  { %v357_v29 = vsel %vm138_vm2, 0.0, %v356_v23  ;;  %v390_v34 = vrot.slane %v361_v27, 4  ;;  %v395_v39 = vperm.slane %v361_v27, %v815_v36 }
 0x1d3   :  { %v365_v33 = vperm.slane %v357_v29, %v804_v20 }
 0x1d4   :  { %v391_v44 = vsel %vm138_vm2, 0.0, %v390_v34  ;;  %v410_v53 = vrot.slane %v395_v39, 4 }
 0x1d5   :  { %v400_v45 = vrot.slane %v365_v33, 4  ;;  %v405_v46 = vperm.slane %v365_v33, %v815_v36  ;;  %v399_v58 = vperm.slane %v391_v44, %v815_v36 }
 0x1d7   :  { %v322_v30 = vpop.permute.xlu0 %321  ;;  %v418_v61 = vrot.slane %v405_v46, 4  ;;  %v401_v62 = vsel %vm138_vm2, 0.0, %v400_v45  ;;  %v414_v5 = vrot.slane %v399_v58, 4 }
 0x1d8   :  { %v332_v35 = vrot.slane %v322_v30, 4  ;;  %v409_v7 = vperm.slane %v401_v62, %v815_v36 }
 0x1da   :  { %v422_v12 = vrot.slane %v409_v7, 4 }
 0x1e8   :  { %v324_v24 = vpop.permute.xlu1 %323 }
 0x1e9   :  { %v344_v25 = vrot.slane %v324_v24, 4  ;;  %v347_v31 = vsel %vm138_vm2, %v324_v24, %v346_v26 }
 0x1ea   :  { %v355_v37 = vperm.slane %v347_v31, %v804_v20  ;;  %v289_v31 = vlaneseq }
 0x1eb   :  { %v345_v28 = vsel %vm138_vm2, %v344_v25, %v320_v21  ;;  %v254_v21 = vsel %vm232_vm3, %v827_v49, -inf }
 0x1ec   :  { %v351_v32 = vperm.slane %v345_v28, %v804_v20  ;;  %v378_v48 = vrot.slane %v355_v37, 4  ;;  %v736_v28 = vmov 0.0   ;;  %v290_v34 = vand.u32 127, %v289_v31 }
 0x1ed   :  { %123 = vst.msk [vmem:[#allocation2] sm:$0xff] %vm122_vm4, %v736_v28 }
 0x1ee   :  { %v366_v42 = vrot.slane %v351_v32, 4 }
 0x1f0   :  { %v318_v38 = vpop.permute.xlu1 %317 }
 0x1f1   :  { %v333_v40 = vsel %vm138_vm2, %v332_v35, %v318_v38  ;;  %v334_v41 = vrot.slane %v318_v38, 4 }
 0x1f2   :  { %v339_v43 = vperm.slane %v333_v40, %v804_v20 }
 0x1f3   :  { %v335_v47 = vsel %vm138_vm2, %v322_v30, %v334_v41  ;;  %v898_v41 = vadd.s32 4294967295, %v290_v34 }
 0x1f4   :  { %v343_v50 = vperm.slane %v335_v47, %v804_v20  ;;  %v368_v51 = vrot.slane %v339_v43, 4  ;;  %v367_v52 = vsel %vm138_vm2, %v366_v42, %v339_v43 }
 0x1f5   :  { %v373_v54 = vperm.slane %v367_v52, %v815_v36 }
 0x1f6   :  { %v380_v55 = vrot.slane %v343_v50, 4  ;;  %v379_v56 = vsel %vm138_vm2, %v378_v48, %v343_v50  ;;  %v369_v57 = vsel %vm138_vm2, %v351_v32, %v368_v51 }
 0x1f7   :  { %v411_v59 = vsel %vm138_vm2, %v410_v53, %v373_v54  ;;  %v385_v60 = vperm.slane %v379_v56, %v815_v36  ;;  %v377_v20 = vperm.slane %v369_v57, %v815_v36  ;;  %v412_v6 = vrot.slane %v373_v54, 4 }
 0x1f8   :  { %v426_v63 = vsel %vm232_vm3, %v411_v59, -inf  ;;  %v381_v3 = vsel %vm138_vm2, %v355_v37, %v380_v55  ;;  %v903_v54 = vadd.s32 4294967288, %v290_v34 }
 0x1f9   :  { %427 = vmax.xlane.f32.xlu2 %v426_v63  ;;  %v419_v0 = vsel %vm138_vm2, %v418_v61, %v385_v60  ;;  %v416_v1 = vrot.slane %v377_v20, 4  ;;  %v415_v9 = vsel %vm138_vm2, %v414_v5, %v377_v20  ;;  %v389_v10 = vperm.slane %v381_v3, %v815_v36 }
 0x1fa   :  { %v438_v2 = vsel %vm232_vm3, %v419_v0, -inf  ;;  %v413_v11 = vsel %vm138_vm2, %v395_v39, %v412_v6  ;;  %v432_v13 = vsel %vm232_vm3, %v415_v9, -inf  ;;  %v420_v15 = vrot.slane %v385_v60, 4 }
 0x1fb   :  { %439 = vmax.xlane.f32.xlu0 %v438_v2  ;;  %v417_v4 = vsel %vm138_vm2, %v399_v58, %v416_v1  ;;  %v423_v14 = vsel %vm138_vm2, %v422_v12, %v389_v10  ;;  %v429_v16 = vsel %vm232_vm3, %v413_v11, -inf  ;;  %v424_v36 = vrot.slane %v389_v10, 4 }
 0x1fc   :  { %v435_v8 = vsel %vm232_vm3, %v417_v4, -inf  ;;  %v444_v17 = vsel %vm232_vm3, %v423_v14, -inf  ;;  %v421_v18 = vsel %vm138_vm2, %v405_v46, %v420_v15 }
 0x1fd   :  { %436 = vmax.xlane.f32.xlu1 %v435_v8  ;;  %v441_v19 = vsel %vm232_vm3, %v421_v18, -inf  ;;  %v425_v22 = vsel %vm138_vm2, %v409_v7, %v424_v36 }
 0x1fe   :  { %v447_v23 = vsel %vm232_vm3, %v425_v22, -inf  ;;  %vm306_vm3 = vcmask 1044484  }
 0x201   :  { %433 = vmax.xlane.f32.xlu2 %v432_v13 }
 0x202   :  { %v235_v26 = vpop.xlane.xlu0 %234 }
 0x203   :  { %430 = vmax.xlane.f32.xlu0 %v429_v16  ;;  %v265_v35 = vmul.f32 0.01, %v235_v26  ;;  %vm257_vm6 = vcmp.ge.f32.partialorder %v235_v26, 0.0 }
 0x205   :  { %445 = vmax.xlane.f32.xlu1 %v444_v17  ;;  %v273_v42 = vsel %vm257_vm6, %v235_v26, %v265_v35  ;;  %vm308_vm6 = vcmask 1045509  }
 0x206   :  { %v292_v48 = vperm.slane %v273_v42, %v898_v41 }
 0x209   :  { %442 = vmax.xlane.f32.xlu2 %v441_v19 }
 0x20a   :  { %v247_v30 = vpop.xlane.xlu0 %246 }
 0x20b   :  { %255 = vmax.xlane.f32.xlu0 %v254_v21  ;;  %vm261_vm10 = vcmp.ge.f32.partialorder %v247_v30, 0.0  ;;  %v269_v51 = vmul.f32 0.01, %v247_v30 }
 0x20d   :  { %v277_v20 = vsel %vm261_vm10, %v247_v30, %v269_v51  ;;  %vm312_vm10 = vcmask 1047559  }
 0x20e   :  { %v296_v7 = vperm.slane %v277_v20, %v898_v41 }
 0x211   :  { %448 = vmax.xlane.f32.xlu2 %v447_v23  ;;  %v241_v25 = vpop.xlane.xlu2 %240 }
 0x212   :  { %v267_v37 = vmul.f32 0.01, %v241_v25  ;;  %vm259_vm7 = vcmp.ge.f32.partialorder %v241_v25, 0.0 }
 0x214   :  { %v275_v43 = vsel %vm259_vm7, %v241_v25, %v267_v37 }
 0x215   :  { %v294_v52 = vperm.slane %v275_v43, %v898_v41 }
 0x219   :  { %v250_v29 = vpop.xlane.xlu2 %249 }
 0x21a   :  { %v270_v53 = vmul.f32 0.01, %v250_v29  ;;  %vm262_vm15 = vcmp.ge.f32.partialorder %v250_v29, 0.0 }
 0x21b   :  { %v238_v24 = vpop.xlane.xlu1 %237 }
 0x21c   :  { %v266_v32 = vmul.f32 0.01, %v238_v24  ;;  %vm258_vm5 = vcmp.ge.f32.partialorder %v238_v24, 0.0  ;;  %v278_v4 = vsel %vm262_vm15, %v250_v29, %v270_v53  ;;  %v698_v53 = vld [vmem:[%s995_s3 + $0x18] sm:$0xff]  ;;  %vm647_vm15 = vcmask 1044480  }
 0x21d   :  { %v297_v15 = vperm.slane %v278_v4, %v898_v41 }
 0x21e   :  { %v274_v39 = vsel %vm258_vm5, %v238_v24, %v266_v32 }
 0x21f   :  { %v293_v44 = vperm.slane %v274_v39, %v898_v41 }
 0x221   :  { %v301_v55 = vsel %vm300_vm9, %v293_v44, %v292_v48  ;;  %v502_v44 = vld [vmem:[%s995_s3] sm:$0xff]  ;;  %v697_v48 = vld [vmem:[%s995_s3 + $0x10] sm:$0xff] }
 0x222   :  { %v303_v62 = vsel %vm302_vm11, %v294_v52, %v301_v55  ;;  %v633_v55 = vld [vmem:[%s997_s5] sm:$0x1f] }
 0x223   :  { %v244_v27 = vpop.xlane.xlu1 %243  ;;  %707 = vmatpush.msk.msra.mxu2 %vm647_vm15, %v633_v55 }
 0x224   :  { %v268_v40 = vmul.f32 0.01, %v244_v27  ;;  %vm260_vm8 = vcmp.ge.f32.partialorder %v244_v27, 0.0 }
 0x226   :  { %v276_v45 = vsel %vm260_vm8, %v244_v27, %v268_v40  ;;  %vm310_vm8 = vcmask 1046534  }
 0x227   :  { %v295_v56 = vperm.slane %v276_v45, %v898_v41  ;;  %v503_v45 = vld [vmem:[%s995_s3 + $0x8] sm:$0xff] }
 0x229   :  { %v305_v5 = vsel %vm304_vm0, %v295_v56, %v303_v62 }
 0x22a   :  { %v307_v16 = vsel %vm306_vm3, %v296_v7, %v305_v5 }
 0x22b   :  { %v253_v33 = vpop.xlane.xlu1 %252  ;;  %v309_v25 = vsel %vm308_vm6, %v297_v15, %v307_v16 }
 0x22c   :  { %v271_v57 = vmul.f32 0.01, %v253_v33  ;;  %vm263_vm1 = vcmp.ge.f32.partialorder %v253_v33, 0.0 }
 0x22e   :  { %v279_v6 = vsel %vm263_vm1, %v253_v33, %v271_v57  ;;  %vm638_vm1 = vcmask 39936  }
 0x22f   :  { %v298_v17 = vperm.slane %v279_v6, %v898_v41 }
 0x231   :  { %v311_v30 = vsel %vm310_vm8, %v298_v17, %v309_v25 }
 0x26c   :  { %v428_v49 = vpop.xlane.xlu2 %427 }
 0x26d   :  { %v458_v46 = vmul.f32 0.01, %v428_v49  ;;  %vm450_vm12 = vcmp.ge.f32.partialorder %v428_v49, 0.0 }
 0x26e   :  { %v896_v38 = vpop.xlane.xlu0 %439 }
 0x26f   :  { %v466_v60 = vsel %vm450_vm12, %v428_v49, %v458_v46  ;;  %vm454_vm4 = vcmp.ge.f32.partialorder %v896_v38, 0.0  ;;  %v462_v8 = vmul.f32 0.01, %v896_v38  ;;  %v607_v46 = vld [vmem:[%s996_s4] sm:$0xff] }
 0x270   :  { %v437_v47 = vpop.xlane.xlu1 %436  ;;  %v483_v1 = vperm.slane %v466_v60, %v903_v54  ;;  %611 = vperm.xlu2 %724, %v607_v46  }
 0x271   :  { %v461_v63 = vmul.f32 0.01, %v437_v47  ;;  %vm453_vm2 = vcmp.ge.f32.partialorder %v437_v47, 0.0  ;;  %v470_v22 = vsel %vm454_vm4, %v896_v38, %v462_v8 }
 0x272   :  { %v487_v31 = vperm.slane %v470_v22, %v903_v54 }
 0x273   :  { %v469_v11 = vsel %vm453_vm2, %v437_v47, %v461_v63  ;;  %v608_v47 = vld [vmem:[%s996_s4 + $0x8] sm:$0xff] }
 0x274   :  { %v434_v50 = vpop.xlane.xlu2 %433  ;;  %v486_v23 = vperm.slane %v469_v11, %v903_v54  ;;  %v726_v11 = vld [vmem:[%s998_s6] ss:$0 sm:$0xff] }
 0x275   :  { %v460_v58 = vmul.f32 0.01, %v434_v50  ;;  %vm452_vm13 = vcmp.ge.f32.partialorder %v434_v50, 0.0 }
 0x276   :  { %v431_v59 = vpop.xlane.xlu0 %430 }
 0x277   :  { %vm451_vm14 = vcmp.ge.f32.partialorder %v431_v59, 0.0  ;;  %v459_v61 = vmul.f32 0.01, %v431_v59  ;;  %v468_v2 = vsel %vm452_vm13, %v434_v50, %v460_v58  ;;  %vm499_vm13 = vcmask 105536   ;;  %v703_v50 = vld [vmem:[%s995_s3 + $0x20] sm:$0xff] }
 0x278   :  { %v485_v12 = vperm.slane %v468_v2, %v903_v54  ;;  %v446_v13 = vpop.xlane.xlu1 %445 }
 0x279   :  { %v467_v0 = vsel %vm451_vm14, %v431_v59, %v459_v61  ;;  %v464_v24 = vmul.f32 0.01, %v446_v13  ;;  %vm511_vm14 = vcmask 64512  }
 0x27a   :  { %v484_v3 = vperm.slane %v467_v0, %v903_v54 }
 0x27c   :  { %v491_v9 = vsel %vm300_vm9, %v484_v3, %v483_v1  ;;  %v443_v10 = vpop.xlane.xlu2 %442  ;;  %vm456_vm9 = vcmp.ge.f32.partialorder %v446_v13, 0.0 }
 0x27d   :  { %vm455_vm5 = vcmp.ge.f32.partialorder %v443_v10, 0.0  ;;  %v463_v14 = vmul.f32 0.01, %v443_v10  ;;  %v492_v19 = vsel %vm302_vm11, %v485_v12, %v491_v9  ;;  %vm315_vm11 = vcmask 48136  }
 0x27e   :  { %v256_v18 = vpop.xlane.xlu0 %255  ;;  %v493_v28 = vsel %vm304_vm0, %v486_v23, %v492_v19  ;;  %v472_v32 = vsel %vm456_vm9, %v446_v13, %v464_v24 }
 0x27f   :  { %v471_v36 = vsel %vm455_vm5, %v443_v10, %v463_v14  ;;  %vm264_vm7 = vcmp.ge.f32.partialorder %v256_v18, 0.0  ;;  %v272_v21 = vmul.f32 0.01, %v256_v18  ;;  %v494_v49 = vsel %vm306_vm3, %v487_v31, %v493_v28 }
 0x280   :  { %v488_v27 = vperm.slane %v471_v36, %v903_v54  ;;  %v489_v38 = vperm.slane %v472_v32, %v903_v54  ;;  %vm680_vm3 = vcmask 23552  }
 0x281   :  { %v280_v26 = vsel %vm264_vm7, %v256_v18, %v272_v21 }
 0x282   :  { %v299_v29 = vperm.slane %v280_v26, %v898_v41  ;;  %v495_v37 = vsel %vm308_vm6, %v488_v27, %v494_v49 }
 0x283   :  { %v496_v41 = vsel %vm310_vm8, %v489_v38, %v495_v37 }
 0x284   :  { %v313_v33 = vsel %vm312_vm10, %v299_v29, %v311_v30  ;;  %v449_v34 = vpop.xlane.xlu2 %448 }
 0x285   :  { %316 = vst.msk [vmem:[#allocation2] sm:$0xff] %vm315_vm11, %v313_v33  ;;  %vm457_vm12 = vcmp.ge.f32.partialorder %v449_v34, 0.0  ;;  %v465_v35 = vmul.f32 0.01, %v449_v34 }
 0x287   :  { %v473_v39 = vsel %vm457_vm12, %v449_v34, %v465_v35 }
 0x288   :  { %v490_v40 = vperm.slane %v473_v39, %v903_v54  ;;  %v704_v54 = vld [vmem:[%s995_s3 + $0x28] sm:$0xff]  ;;  %s737_s3 = smov 121  }
 0x28a   :  { %v497_v42 = vsel %vm312_vm10, %v490_v40, %v496_v41 }
 0x28b   :  { %500 = vst.msk [vmem:[#allocation2] sm:$0xff] %vm499_vm13, %v497_v42 }
 0x292   :  { %v501_v43 = vld [vmem:[#allocation2] sm:$0xff] }
 0x293   :  { %573 = vrot.lane.b32.xlu1 %v501_v43, %s727_s26  ;;  %508 = vrot.lane.b32.xlu0 %v501_v43, %s728_s27 }
 0x294   :  { %562 = vmatpush.msrb.mxu0 %v501_v43 }
 0x295   :  { %701 = vmatmul.msk.f32.vlgmr.msrb.gmra.mxu0 %vm511_vm14, %v502_v44 }
 0x29b   :  { %616 = vperm.xlu0 %725, %v608_v47  }
 0x29d   :  { %702 = vmatmul.msk.f32.gmra.mxu0 %vm511_vm14, %v503_v45 }
 0x2ca   :  { %v612_v60 = vpop.permute.xlu2 %611 }
 0x305   :  { %v574_v51 = vpop.permute.xlu1 %573  ;;  %v509_v52 = vpop.permute.xlu0 %508 }
 0x306   :  { %533 = vmatpush.msrb.mxu3 %v509_v52  ;;  %597 = vmatpush.msrb.mxu1 %v574_v51 }
 0x307   :  { %699 = vmatmul.msk.f32.vlgmr.msrb.gmra.mxu3 %vm511_vm14, %v697_v48  ;;  %705 = vmatmul.msk.f32.vlgmr.msrb.gmra.mxu1 %vm511_vm14, %v703_v50 }
 0x30d   :  { %v617_v4 = vpop.permute.xlu0 %616 }
 0x30f   :  { %700 = vmatmul.msk.f32.gmra.mxu3 %vm511_vm14, %v698_v53  ;;  %706 = vmatmul.msk.f32.gmra.mxu1 %vm511_vm14, %v704_v54 }
 0x312   :  { %v564_v56 = vpop.f32.mrf.mxu0 }
 0x31a   :  { %v567_v62 = vpop.f32.mrf.mxu0 }
 0x384   :  { %v599_v58 = vpop.f32.mrf.mxu1 }
 0x38a   :  { %v535_v57 = vpop.f32.mrf.mxu3 }
 0x38b   :  { %v565_v59 = vadd.f32 %v564_v56, %v535_v57 }
 0x38c   :  { %v602_v1 = vpop.f32.mrf.mxu1 }
 0x38d   :  { %v605_v61 = vadd.f32 %v599_v58, %v565_v59 }
 0x38f   :  { %v619_v20 = vadd.f32 %v612_v60, %v605_v61 }
 0x391   :  { %v623_v63 = vmul.f32 0.01, %v619_v20  ;;  %vm621_vm0 = vcmp.ge.f32.partialorder %v619_v20, 0.0 }
 0x392   :  { %v538_v0 = vpop.f32.mrf.mxu3 }
 0x393   :  { %v625_v2 = vsel %vm621_vm0, %v619_v20, %v623_v63  ;;  %v568_v3 = vadd.f32 %v567_v62, %v538_v0 }
 0x394   :  { %629 = vrot.lane.b32.xlu1 %v625_v2, %s737_s3  ;;  %708 = vmatmul.msk.f32.vlgmr.msra.gmra.mxu2 %vm638_vm1, %v625_v2 }
 0x395   :  { %v606_v5 = vadd.f32 %v602_v1, %v568_v3 }
 0x397   :  { %v620_v6 = vadd.f32 %v617_v4, %v606_v5 }
 0x399   :  { %v624_v7 = vmul.f32 0.01, %v620_v6  ;;  %vm622_vm2 = vcmp.ge.f32.partialorder %v620_v6, 0.0 }
 0x39b   :  { %v626_v8 = vsel %vm622_vm2, %v620_v6, %v624_v7 }
 0x39c   :  { %631 = vrot.lane.b32.xlu2 %v626_v8, %s737_s3  ;;  %709 = vmatmul.msk.f32.gmra.mxu2 %vm638_vm1, %v626_v8 }
 0x3f6   :  { %v632_v10 = vpop.permute.xlu2 %631 }
 0x406   :  { %v630_v9 = vpop.permute.xlu1 %629 }
 0x407   :  { %710 = vmatmul.msk.f32.gmra.mxu2 %vm638_vm1, %v630_v9 }
 0x40f   :  { %711 = vmatmul.msk.f32.gmra.mxu2 %vm638_vm1, %v632_v10 }
 0x417   :  { %v668_v12 = vpop.f32.mrf.mxu2 }
 0x418   :  { %v669_v13 = vadd.f32 %v726_v11, %v668_v12 }
 0x41a   :  { %681 = vst.msk [vmem:[%s999_s7] sm:$0xff] %vm680_vm3, %v669_v13 }
 0x41f   :  { %v671_v14 = vpop.f32.mrf.mxu2 }
 0x420   :  { %v672_v15 = vadd.f32 %v726_v11, %v671_v14 }
 0x422   :  { %682 = vst.msk [vmem:[%s999_s7 + $0x8] sm:$0xff] %vm680_vm3, %v672_v15 }
 0x48a   :  { %v674_v16 = vpop.f32.mrf.mxu2 }
 0x48b   :  { %v675_v17 = vadd.f32 %v726_v11, %v674_v16 }
 0x48d   :  { %683 = vst.msk [vmem:[%s999_s7 + $0x10] sm:$0xff] %vm680_vm3, %v675_v17 }
 0x492   :  { %v677_v18 = vpop.f32.mrf.mxu2 }
 0x493   :  { %v678_v19 = vadd.f32 %v726_v11, %v677_v18 }
 0x495   :  { %684 = vst.msk [vmem:[%s999_s7 + $0x18] sm:$0xff] %vm680_vm3, %v678_v19 }

</bundles_post_ra>
